<compile_context>
chip_gen: v7x
topology: tpu7x:2x2x1
jax: 0.10.0
libtpu: 0.0.40
codegen_flags: <defaults>
</compile_context>

<pallas_src>
import functools

import jax
import jax.numpy as jnp
from jax.experimental import pallas as pl
from jax.experimental.pallas import tpu as pltpu

_LANES = 128
_MIB = 1024 * 1024


def _swish_kernel(beta_ref, x_ref, o_ref):
    beta = beta_ref[0, 0]
    x = x_ref[...].astype(jnp.float32)
    # sigmoid(b*x) == 0.5 * (tanh(b*x/2) + 1): EUP tanh, no VALU divide.
    z = (0.5 * beta) * x
    sig = 0.5 * (jnp.tanh(z) + 1.0)
    o_ref[...] = (x * sig).astype(o_ref.dtype)


def _round_up(a: int, b: int) -> int:
    return ((a + b - 1) // b) * b


def _sublane_multiple(dtype) -> int:
    # dtype packing granularity along the sublane axis.
    return {4: 8, 2: 16, 1: 32}.get(jnp.dtype(dtype).itemsize, 8)


@functools.lru_cache(maxsize=1)
def _detect_tpu():
    """Return (vmem_bytes_per_core, tensorcores_per_chip).

    Conservative defaults (64 MiB, 1 TC) if detection fails: safe tile / VMEM
    budget everywhere, and no forced extra grid steps on 1-TC parts.
    """
    vmem_bytes = 64 * _MIB
    num_tc = 1
    try:
        info = pltpu.get_tpu_info()
        cap = getattr(info, "vmem_capacity_bytes", None)
        if cap:
            vmem_bytes = int(cap)
    except Exception:
        pass
    try:
        kind = jax.devices()[0].device_kind.lower()
        if "v7" in kind:  # v7x: 2 TensorCores per chip, 64 MiB VMEM per TC.
            num_tc = 2
            vmem_bytes = min(vmem_bytes, 64 * _MIB)
    except Exception:
        pass
    return vmem_bytes, num_tc


def swish(x: jax.Array, beta: jax.Array) -> jax.Array:
    """Swish forward: x * sigmoid(beta * x). beta is a scalar parameter."""
    orig_shape = x.shape
    dtype = x.dtype
    n = x.size
    if n == 0:
        return x

    itemsize = jnp.dtype(dtype).itemsize
    sub = _sublane_multiple(dtype)
    beta_f32 = jnp.asarray(beta, dtype=jnp.float32)

    rows = n // _LANES
    rem = n - rows * _LANES
    x_flat = jnp.reshape(x, (-1,))  # contiguous flatten (layout preserving)

    def _plain(v):
        v32 = v.astype(jnp.float32)
        return (v32 * jax.nn.sigmoid(beta_f32 * v32)).astype(dtype)

    if rows == 0:
        # Fewer than 128 elements: a kernel launch is pure overhead.
        return jnp.reshape(_plain(x_flat), orig_shape)

    main = rows * _LANES
    if rem == 0:
        x2d = jnp.reshape(x_flat, (rows, _LANES))
    else:
        # Aligned prefix through the kernel; the <128-element tail is handled
        # in plain JAX below.  No full-tensor pad and no full-tensor slice.
        x2d = jnp.reshape(jax.lax.slice(x_flat, (0,), (main,)), (rows, _LANES))

    vmem_bytes, num_tc = _detect_tpu()

    # Byte-based tile sizing (dtype-aware): ~4 MiB on 64 MiB-VMEM parts (v7x),
    # ~8 MiB on 128 MiB-VMEM parts (v5e/v6e) where the extra in-flight bytes
    # are free and shave remaining per-grid-step overhead.
    target_block_bytes = 8 * _MIB if vmem_bytes >= 128 * _MIB else 4 * _MIB
    rows_cap = max(sub, target_block_bytes // (_LANES * itemsize))

    grid_len = pl.cdiv(rows, rows_cap)
    # Only on 2-TensorCore chips: keep >= 2 balanced blocks for mid/large
    # inputs so the "parallel" axis can be sharded across both cores.
    if (num_tc >= 2 and grid_len == 1 and rows >= 2 * sub
            and main * itemsize >= 1 * _MIB):
        grid_len = 2
    # Balanced blocks: choose grid first, then equal-sized tiles (rounded to
    # the dtype sublane multiple).  Avoids near-empty tail blocks.
    tr = _round_up(pl.cdiv(rows, grid_len), sub)
    grid_len = pl.cdiv(rows, tr)

    block_bytes = tr * _LANES * itemsize
    # in + out, double-buffered = 4 * block_bytes, plus headroom for the f32
    # upcast temporaries; never more than half of the per-core VMEM.
    vmem_limit = min(max(4 * block_bytes + 16 * _MIB, 32 * _MIB),
                     max(32 * _MIB, vmem_bytes // 2))

    beta_arr = jnp.reshape(beta_f32, (1, 1))

    out2d = pl.pallas_call(
        _swish_kernel,
        out_shape=jax.ShapeDtypeStruct((rows, _LANES), dtype),
        grid=(grid_len,),
        in_specs=[
            pl.BlockSpec(memory_space=pltpu.SMEM),           # beta scalar
            pl.BlockSpec((tr, _LANES), lambda i: (i, 0)),    # x tile (lane-dense)
        ],
        out_specs=pl.BlockSpec((tr, _LANES), lambda i: (i, 0)),
        compiler_params=pltpu.CompilerParams(
            dimension_semantics=("parallel",),
            vmem_limit_bytes=int(vmem_limit),
        ),
    )(beta_arr, x2d)

    out_main = jnp.reshape(out2d, (-1,))
    if rem == 0:
        return jnp.reshape(out_main, orig_shape)
    tail = jax.lax.slice(x_flat, (main,), (n,))
    out_flat = jnp.concatenate([out_main, _plain(tail)])
    return jnp.reshape(out_flat, orig_shape)


class SwishModule:
    """Mirror of the PyTorch Swish module (beta parameter, default 1.0)."""

    def __init__(self, beta: float = 1.0, train_beta: bool = True):
        self.train_beta = train_beta
        # deterministic init, matches torch.tensor(float(beta))
        self.beta = jnp.asarray(float(beta), dtype=jnp.float32)

    def __call__(self, x: jax.Array) -> jax.Array:
        return swish(x, self.beta)


if __name__ == "__main__":
    key = jax.random.PRNGKey(0)
    module = SwishModule(beta=1.0, train_beta=True)

    # Main case: n % 128 == 0 (zero-copy kernel path).
    x = jax.random.normal(key, (2, 4, 16, 16), dtype=jnp.float32)
    out = jax.block_until_ready(module(x))
    ref = x * jax.nn.sigmoid(module.beta * x)
    assert out.shape == x.shape and out.dtype == x.dtype
    assert jnp.allclose(out, ref, atol=1e-5, rtol=1e-5)

    # Tiny (< 128 elements): plain-JAX fallback path.
    x2 = jax.random.normal(jax.random.PRNGKey(1), (3, 5, 7), dtype=jnp.float32)
    out2 = jax.block_until_ready(module(x2))
    ref2 = x2 * jax.nn.sigmoid(module.beta * x2)
    assert jnp.allclose(out2, ref2, atol=1e-5, rtol=1e-5)

    # Unaligned (n % 128 != 0): kernel on the aligned prefix + plain-JAX tail.
    x3 = jax.random.normal(jax.random.PRNGKey(2), (7, 37), dtype=jnp.float32)
    out3 = jax.block_until_ready(module(x3))
    ref3 = x3 * jax.nn.sigmoid(module.beta * x3)
    assert out3.shape == x3.shape and jnp.allclose(out3, ref3, atol=1e-5, rtol=1e-5)

    # bf16 path (dtype-aware sublane rounding).
    x4 = jax.random.normal(jax.random.PRNGKey(3), (4, 96), dtype=jnp.bfloat16)
    out4 = jax.block_until_ready(module(x4))
    x4f = x4.astype(jnp.float32)
    ref4 = (x4f * jax.nn.sigmoid(module.beta * x4f)).astype(jnp.bfloat16)
    assert out4.dtype == jnp.bfloat16
    assert jnp.allclose(out4.astype(jnp.float32), ref4.astype(jnp.float32),
                        atol=2e-2, rtol=2e-2)

    print("KERNEL_OK")
</pallas_src>

<mosaic_0001>
module attributes {stable_mosaic.version = 11 : i64} {
  func.func @_swish_kernel(%arg0: i32, %arg1: memref<1x1xf32, #tpu.memory_space<smem>>, %arg2: memref<16x128xf32, #tpu.memory_space<vmem>>, %arg3: memref<16x128xf32, #tpu.memory_space<vmem>>) attributes {dimension_semantics = [#tpu.dimension_semantics<parallel>], iteration_bounds = array<i64: 1>, scalar_prefetch = 0 : i64, scratch_operands = 0 : i64, tpu.core_type = #tpu.core_type<tc>, window_params = [{transform_indices = @transform_0, window_bounds = array<i64: 1, 1>}, {transform_indices = @transform_1, window_bounds = array<i64: 16, 128>}, {transform_indices = @transform_2, window_bounds = array<i64: 16, 128>}]} {
    %c0 = arith.constant 0 : index
    %c0_0 = arith.constant 0 : index
    %0 = memref.load %arg1[%c0, %c0_0] : memref<1x1xf32, #tpu.memory_space<smem>>
    %c0_1 = arith.constant 0 : index
    %c0_2 = arith.constant 0 : index
    %1 = vector.load %arg2[%c0_1, %c0_2] : memref<16x128xf32, #tpu.memory_space<vmem>>, vector<16x128xf32>
    %cst = arith.constant 5.000000e-01 : f32
    %2 = arith.mulf %cst, %0 : f32
    %3 = vector.broadcast %2 : f32 to vector<16x128xf32>
    %4 = arith.mulf %3, %1 : vector<16x128xf32>
    %5 = math.tanh %4 : vector<16x128xf32>
    %cst_3 = arith.constant 1.000000e+00 : f32
    %6 = vector.broadcast %cst_3 : f32 to vector<16x128xf32>
    %7 = arith.addf %5, %6 : vector<16x128xf32>
    %cst_4 = arith.constant 5.000000e-01 : f32
    %8 = vector.broadcast %cst_4 : f32 to vector<16x128xf32>
    %9 = arith.mulf %8, %7 : vector<16x128xf32>
    %10 = arith.mulf %1, %9 : vector<16x128xf32>
    %c0_5 = arith.constant 0 : index
    %c0_6 = arith.constant 0 : index
    %11 = vector.load %arg3[%c0_5, %c0_6] : memref<16x128xf32, #tpu.memory_space<vmem>>, vector<16x128xf32>
    tpu.vector_store %arg3[%c0_5, %c0_6], %10 {strides = array<i32>} : memref<16x128xf32, #tpu.memory_space<vmem>>, vector<16x128xf32>,
    return
  }
  func.func @transform_0(%arg0: i32) -> (i32, i32) {
    %c0_i32 = arith.constant 0 : i32
    %c0_i32_0 = arith.constant 0 : i32
    %c0_i32_1 = arith.constant 0 : i32
    return %c0_i32, %c0_i32_0 : i32, i32
  }
  func.func @transform_1(%arg0: i32) -> (i32, i32) {
    %c0_i32 = arith.constant 0 : i32
    %c0_i32_0 = arith.constant 0 : i32
    return %arg0, %c0_i32 : i32, i32
  }
  func.func @transform_2(%arg0: i32) -> (i32, i32) {
    %c0_i32 = arith.constant 0 : i32
    %c0_i32_0 = arith.constant 0 : i32
    return %arg0, %c0_i32 : i32, i32
  }
}

</mosaic_0001>

<bundles_post_ra>
// kernel: tpu_custom_call.1
= control target key start
LH: loop header
LB: loop body
LE: loop exit
PB: predicated region body
PF: predicated region fallthrough
CT: control target
= control target key end

     0   :  { %8 = vsyncpa [#allocation4], 0  ;;  %s169_s0 = inlined_call_operand.<no memory space> [shape: f32[1,1], index: 0, kind: input, shape index: {}]   ;;  %s170_s1 = inlined_call_operand.hbm [shape: f32[16,128], index: 1, kind: input, shape index: {}]   ;;  %s171_s2 = inlined_call_operand.hbm [shape: f32[16,128], index: 2, kind: output, shape index: {}]  }
   0x1   :  { %9 = vsyncpa [#allocation5], 0  ;;  %s117_s9 = smov [#allocation3]   ;;  %s69_s13 = scalar_lea.hbm %s170_s1, 256 }
   0x2   :  { %s17_s10 = sshll.u32 %s117_s9, 4  ;;  %p70_p0 = scmp.ne.s32.totalorder %s170_s1, %s69_s13  ;;  %s18_s10 = int_to_ptr.vmem [resolvable:$true] %s17_s10 }
   0x3   :  { %p73_p1 = scmp.lt.u32.totalorder %s69_s13, %s170_s1 }
   0x5   :  { %p75_p2 = pnand %p73_p1, %p70_p0 }
   0x7   :  { %78 = shalt.err (!%p75_p2)
}
   0x8   :  { %s79_s18 = scalar_lea.vmem %s18_s10, 256  ;;  %p84_p4 = scmp.lt.s32.totalorder %s18_s10, %s18_s10 }
   0x9   :  { %p80_p3 = scmp.ne.s32.totalorder %s18_s10, %s79_s18  ;;  %p85_p5 = scmp.lt.s32.totalorder %s79_s18, %s79_s18 }
   0xb   :  { %p86_p6 = por %p85_p5, %p84_p4 }
   0xd   :  { %p87_p7 = pnand %p86_p6, %p80_p3 }
   0xf   :  { %90 = shalt.err (!%p87_p7)
}
  0x10   :  { %s118_s19 = smov 128   ;;  %s119_s20 = smov 8  }
  0x11   :  { %23 = dma.hbm_to_vmem [thread:$0]  %s170_s1, 256, %s18_s10, [#allocation4], %s118_s19, %s118_s19, %s119_s20  }
  0x12   :  { %113 = dma.done.wait [#allocation4], 256  }
  0x13   :  { %114 = vsyncadd [#allocation4], 4294967040  ;;  %s30_s25 = smul.f32 0.5, %s169_s0  ;;  %v28_v1 = vld [vmem:[#allocation3] sm:$0xff]  ;;  %v29_v2 = vld [vmem:[#allocation3 + $0x8] sm:$0xff]  ;;  %s120_s26 = smov [#allocation6]  }
  0x14   :  { %s49_s1 = sshll.u32 %s120_s26, 4  ;;  %s50_s1 = int_to_ptr.vmem [resolvable:$true] %s49_s1 }
  0x15   :  { %v31_v0 = vstv %s30_s25  ;;  %s91_s0 = scalar_lea.vmem %s50_s1, 256  ;;  %p96_p9 = scmp.lt.s32.totalorder %s50_s1, %s50_s1 }
  0x16   :  { %v32_v3 = vmul.f32 %v31_v0, %v28_v1  ;;  %v33_v4 = vmul.f32 %v31_v0, %v29_v2  ;;  %p92_p8 = scmp.ne.s32.totalorder %s50_s1, %s91_s0  ;;  %p97_p10 = scmp.lt.s32.totalorder %s91_s0, %s91_s0 }
  0x18   :  { %65 = vtanh.f32 %v32_v3  ;;  %p98_p11 = por %p97_p10, %p96_p9 }
  0x19   :  { %67 = vtanh.f32 %v33_v4 }
  0x1a   :  { %p99_p12 = pnand %p98_p11, %p92_p8 }
  0x22   :  { %v66_v5 = vpop.eup %65 }
  0x23   :  { %v68_v6 = vpop.eup %67  ;;  %v36_v7 = vadd.f32 1.0, %v66_v5 }
  0x24   :  { %v37_v8 = vadd.f32 1.0, %v68_v6 }
  0x25   :  { %v38_v9 = vmul.f32 0.5, %v36_v7 }
  0x26   :  { %v39_v10 = vmul.f32 0.5, %v37_v8 }
  0x27   :  { %v40_v11 = vmul.f32 %v38_v9, %v28_v1 }
  0x28   :  { %v41_v12 = vmul.f32 %v39_v10, %v29_v2 }
  0x29   :  { %42 = vst [vmem:[#allocation6] sm:$0xff] %v40_v11 }
  0x2a   :  { %43 = vst [vmem:[#allocation6 + $0x8] sm:$0xff] %v41_v12 }
  0x2b   :  { %102 = shalt.err (!%p99_p12)
}
  0x2c   :  { %s103_s29 = scalar_lea.hbm %s171_s2, 256 }
  0x2d   :  { %p104_p13 = scmp.ne.s32.totalorder %s171_s2, %s103_s29  ;;  %p107_p0 = scmp.lt.u32.totalorder %s103_s29, %s171_s2 }
  0x2f   :  { %p109_p1 = pnand %p107_p0, %p104_p13 }
  0x31   :  { %112 = shalt.err (!%p109_p1)
}
  0x32   :  { %55 = dma.vmem_to_hbm [thread:$0]  %s50_s1, 256, %s171_s2, [#allocation5], %s118_s19, %s118_s19, %s119_s20  }
  0x33   :  { %115 = dma.done.wait [#allocation5], 256  }
  0x34   :  { %116 = vsyncadd [#allocation5], 4294967040 }
  0x35   :  { %59 = vsyncpa [#allocation4], 1 }
  0x36   :  { %60 = vsyncpa [#allocation5], 1 }

</bundles_post_ra>
